<compile_context>
chip_gen: v6e
topology: v6e:2x2x1
jax: 0.10.0
libtpu: 0.0.40
codegen_flags: <defaults>
</compile_context>

<pallas_src>
import jax
import jax.numpy as jnp
from jax.experimental import pallas as pl
from jax.experimental.pallas import tpu as pltpu


def _semble_kernel(w_ref, b_ref, x_ref, o_ref):
    # w_ref: (1, S) VMEM (grid-invariant)
    # b_ref: (1, 1) SMEM scalar bias
    # x_ref: (TILE_M, S) VMEM tile of flattened rows
    # o_ref: (1, TILE_M) VMEM lane-dense output row
    acc = jax.lax.dot_general(
        w_ref[...], x_ref[...],
        dimension_numbers=(((1,), (1,)), ((), ())),   # contract over S on the MXU
        preferred_element_type=jnp.float32,
    )                                                  # (1, TILE_M) f32
    o_ref[...] = acc + b_ref[0, 0]


def semble_forward(data, weight, bias, *, max_tile_m=1024):
    """data: (B, N, S), weight: (1, S), bias: (1,) -> logits (B, N) f32."""
    B, N, S = data.shape
    M = B * N
    x2d = data.reshape(M, S)                      # no data movement
    itemsize = jnp.dtype(data.dtype).itemsize

    # Largest row tile whose double-buffered input stays inside a conservative
    # VMEM budget (sized for v7x's 64 MiB VMEM); multiple of 128 so the output
    # block stays lane-dense when the grid has more than one step.
    budget = 24 * 1024 * 1024
    fit = max(128, (budget // (2 * S * itemsize)) // 128 * 128)
    tile_m = int(min(max_tile_m, fit))
    if M <= tile_m:
        tile_m = M                                # single block: dims == array dims
    grid = pl.cdiv(M, tile_m)
    m_pad = grid * tile_m

    vmem_need = 2 * tile_m * S * itemsize + 2 * tile_m * 4 + S * 4 + (4 << 20)
    vmem_limit = int(min(max(vmem_need, 32 << 20), 48 << 20))

    out = pl.pallas_call(
        _semble_kernel,
        out_shape=jax.ShapeDtypeStruct((1, m_pad), jnp.float32),
        grid=(grid,),
        in_specs=[
            pl.BlockSpec((1, S), lambda i: (0, 0)),        # weight: fetched once
            pl.BlockSpec(memory_space=pltpu.SMEM),         # bias scalar in SMEM
            pl.BlockSpec((tile_m, S), lambda i: (i, 0)),   # data rows: streamed/pipelined
        ],
        out_specs=pl.BlockSpec((1, tile_m), lambda i: (0, i)),
        compiler_params=pltpu.CompilerParams(
            dimension_semantics=("parallel",),
            vmem_limit_bytes=vmem_limit,
        ),
    )(
        weight.astype(data.dtype),                 # tiny (1, S) cast; big tensor untouched
        bias.reshape(1, 1).astype(jnp.float32),
        x2d,
    )
    # Drop the padded tail and restore (B, N).
    return out.reshape(m_pad)[:M].reshape(B, N)


if __name__ == "__main__":
    # Small shapes consistent with the module: batch=2, seq N=8, size(hidden)=32.
    B, N, S = 2, 8, 32
    key = jax.random.PRNGKey(0)
    k_data, k_w, k_d2, k_w2 = jax.random.split(key, 4)

    data = jax.random.normal(k_data, (B, N, S), dtype=jnp.float32)
    # Mirrors torch.nn.init.normal_(weight, 0, 0.03) and bias.fill_(0).
    weight = 0.03 * jax.random.normal(k_w, (1, S), dtype=jnp.float32)
    bias = jnp.zeros((1,), dtype=jnp.float32)

    logits = jax.block_until_ready(semble_forward(data, weight, bias))
    ref = jnp.sum(data * weight[None, :, :], axis=2) + bias[0]
    assert logits.shape == (B, N)
    assert jnp.allclose(logits, ref, atol=1e-5, rtol=1e-5)

    # Second check: exercises the multi-step grid + ragged last tile path.
    B2, N2, S2 = 3, 50, 256
    data2 = jax.random.normal(k_d2, (B2, N2, S2), dtype=jnp.float32)
    weight2 = 0.03 * jax.random.normal(k_w2, (1, S2), dtype=jnp.float32)
    bias2 = jnp.full((1,), 0.5, dtype=jnp.float32)
    logits2 = jax.block_until_ready(
        semble_forward(data2, weight2, bias2, max_tile_m=128))
    ref2 = jnp.sum(data2 * weight2[None, :, :], axis=2) + bias2[0]
    assert logits2.shape == (B2, N2)
    assert jnp.allclose(logits2, ref2, atol=1e-4, rtol=1e-4)

    print("KERNEL_OK")
</pallas_src>

<mosaic_0001>
module attributes {stable_mosaic.version = 11 : i64} {
  func.func @_semble_kernel(%arg0: i32, %arg1: memref<1x32xf32, #tpu.memory_space<vmem>>, %arg2: memref<1x1xf32, #tpu.memory_space<smem>>, %arg3: memref<16x32xf32, #tpu.memory_space<vmem>>, %arg4: memref<1x16xf32, #tpu.memory_space<vmem>>) attributes {dimension_semantics = [#tpu.dimension_semantics<parallel>], iteration_bounds = array<i64: 1>, scalar_prefetch = 0 : i64, scratch_operands = 0 : i64, tpu.core_type = #tpu.core_type<tc>, window_params = [{pipeline_mode = #tpu.pipeline_mode<synchronous>, transform_indices = @transform_0, window_bounds = array<i64: 1, 32>}, {transform_indices = @transform_1, window_bounds = array<i64: 1, 1>}, {transform_indices = @transform_2, window_bounds = array<i64: 16, 32>}, {transform_indices = @transform_3, window_bounds = array<i64: 1, 16>}]} {
    %c0 = arith.constant 0 : index
    %c0_0 = arith.constant 0 : index
    %0 = vector.load %arg1[%c0, %c0_0] : memref<1x32xf32, #tpu.memory_space<vmem>>, vector<1x32xf32>
    %c0_1 = arith.constant 0 : index
    %c0_2 = arith.constant 0 : index
    %1 = vector.load %arg3[%c0_1, %c0_2] : memref<16x32xf32, #tpu.memory_space<vmem>>, vector<16x32xf32>
    %cst = arith.constant dense<0.000000e+00> : vector<1x16xf32>
    %2 = tpu.matmul %0, %1, %cst {dimension_numbers = #tpu.dot_dimension_numbers<[1], [1], [0], [0], [0, 0, 1, 0], [], []>} : vector<1x32xf32>, vector<16x32xf32>, vector<1x16xf32> -> vector<1x16xf32>
    %c0_3 = arith.constant 0 : index
    %c0_4 = arith.constant 0 : index
    %3 = memref.load %arg2[%c0_3, %c0_4] : memref<1x1xf32, #tpu.memory_space<smem>>
    %4 = vector.broadcast %3 : f32 to vector<1x16xf32>
    %5 = arith.addf %2, %4 : vector<1x16xf32>
    %c0_5 = arith.constant 0 : index
    %c0_6 = arith.constant 0 : index
    %6 = vector.load %arg4[%c0_5, %c0_6] : memref<1x16xf32, #tpu.memory_space<vmem>>, vector<1x16xf32>
    tpu.vector_store %arg4[%c0_5, %c0_6], %5 {strides = array<i32>} : memref<1x16xf32, #tpu.memory_space<vmem>>, vector<1x16xf32>,
    return
  }
  func.func @transform_0(%arg0: i32) -> (i32, i32) {
    %c0_i32 = arith.constant 0 : i32
    %c0_i32_0 = arith.constant 0 : i32
    %c0_i32_1 = arith.constant 0 : i32
    return %c0_i32, %c0_i32_0 : i32, i32
  }
  func.func @transform_1(%arg0: i32) -> (i32, i32) {
    %c0_i32 = arith.constant 0 : i32
    %c0_i32_0 = arith.constant 0 : i32
    %c0_i32_1 = arith.constant 0 : i32
    return %c0_i32, %c0_i32_0 : i32, i32
  }
  func.func @transform_2(%arg0: i32) -> (i32, i32) {
    %c0_i32 = arith.constant 0 : i32
    %c0_i32_0 = arith.constant 0 : i32
    return %arg0, %c0_i32 : i32, i32
  }
  func.func @transform_3(%arg0: i32) -> (i32, i32) {
    %c0_i32 = arith.constant 0 : i32
    %c0_i32_0 = arith.constant 0 : i32
    return %c0_i32, %arg0 : i32, i32
  }
}

</mosaic_0001>

<bundles_post_ra>
// kernel: tpu_custom_call.1
= control target key start
LH: loop header
LB: loop body
LE: loop exit
PB: predicated region body
PF: predicated region fallthrough
CT: control target
= control target key end

     0   :  { %9 = vsyncpa [#allocation4], 0  ;;  %s233_s0 = inlined_call_operand.vmem [shape: f32[1,32], index: 0, kind: input, shape index: {}]   ;;  %s234_s1 = inlined_call_operand.<no memory space> [shape: f32[1,1], index: 1, kind: input, shape index: {}]   ;;  %s235_s2 = inlined_call_operand.hbm [shape: f32[16,32], index: 2, kind: input, shape index: {}]   ;;  %s236_s3 = inlined_call_operand.hbm [shape: f32[1,16], index: 3, kind: output, shape index: {}]  }
   0x1   :  { %10 = vsyncpa [#allocation5], 0  ;;  %s195_s12 = smov [#allocation3]  }
   0x2   :  { %s20_s13 = sshll.u32 %s195_s12, 4  ;;  %s21_s13 = int_to_ptr.vmem [resolvable:$true] %s20_s13 }
   0x3   :  { %s159_s14 = scalar_lea.vmem %s21_s13, 256  ;;  %p164_p1 = scmp.lt.s32.totalorder %s21_s13, %s21_s13 }
   0x4   :  { %p160_p0 = scmp.ne.s32.totalorder %s21_s13, %s159_s14  ;;  %p165_p2 = scmp.lt.s32.totalorder %s159_s14, %s159_s14 }
   0x6   :  { %p166_p3 = por %p165_p2, %p164_p1 }
   0x8   :  { %p167_p4 = pnand %p166_p3, %p160_p0 }
   0xa   :  { %170 = shalt.err (!%p167_p4)
}
   0xb   :  { %s196_s15 = smov 128   ;;  %s197_s16 = smov 8  }
   0xc   :  { %26 = dma.hbm_to_vmem [thread:$0]  %s235_s2, 256, %s21_s13, [#allocation4], %s196_s15, %s196_s15, %s197_s16  }
   0xd   :  { %191 = dma.done.wait [#allocation4], 256  }
   0xe   :  { %192 = vsyncadd [#allocation4], 4294967040  ;;  %v198_v0 = vmov 0.0   ;;  %vm199_vm0 = vmmov 0   ;;  %vm35_vm1 = vcmask 261120   ;;  %v32_v1 = vld [vmem:[#allocation3 + $0x8] sm:$0xff]  ;;  %v34_v4 = vstv %s234_s1 }
   0xf   :  { %138 = vmatprep.subr.mxu0 %v198_v0  ;;  %142 = vmatprep.mubr.msk.f32.mxu0 %vm199_vm0, %v198_v0  ;;  %v31_v2 = vld [vmem:[#allocation3] sm:$0xff]  ;;  %s200_s2 = smov [#allocation6]   ;;  %vm115_vm2 = vcmask 122880  }
  0x10   :  { %139 = vmatpush3.xpose.msk.msra.mxu0 %vm35_vm1, %v32_v1  ;;  %v30_v3 = vld [vmem:[%s233_s0] sm:$0x1]  ;;  %s123_s23 = sshll.u32 %s200_s2, 4  ;;  %s124_s23 = int_to_ptr.vmem [resolvable:$true] %s123_s23 }
  0x11   :  { %140 = vmatprep.subr.mxu0 %v198_v0  ;;  %s171_s24 = scalar_lea.vmem %s124_s23, 16  ;;  %s175_s25 = scalar_lea.vmem %s124_s23, 32 }
  0x12   :  { %p172_p5 = scmp.ne.s32.totalorder %s124_s23, %s171_s24  ;;  %p176_p6 = scmp.lt.s32.totalorder %s124_s23, %s124_s23 }
  0x13   :  { %p177_p7 = scmp.lt.s32.totalorder %s175_s25, %s171_s24 }
  0x14   :  { %141 = vmatpush3.xpose.msk.msra.mxu0 %vm35_vm1, %v31_v2 }
  0x15   :  { %p178_p8 = por %p177_p7, %p176_p6 }
  0x17   :  { %143 = vmatmul.mubr.msk.f32.vlgmr.msra.gmra.mxu0 %vm35_vm1, %v30_v3  ;;  %p179_p9 = pnand %p178_p8, %p172_p5 }
  0xd7   :  { %v111_v5 = vpop.f32.mrf.mxu0 }
  0xd8   :  { %v112_v6 = vadd.f32 %v111_v5, %v34_v4 }
  0xd9   :  { %v144_v7 = vpop.f32.mrf.mxu0 }
  0xda   :  { %116 = vst.msk [vmem:[#allocation6] sm:$0x1] %vm115_vm2, %v112_v6 }
  0xdb   :  { %182 = shalt.err (!%p179_p9)
}
  0xdc   :  { %126 = dma.vmem_to_hbm [thread:$0]  %s124_s23, 16, %s236_s3, [#allocation5]  }
  0xdd   :  { %193 = dma.done.wait [#allocation5], 16  }
  0xde   :  { %194 = vsyncadd [#allocation5], 4294967280 }
  0xdf   :  { %130 = vsyncpa [#allocation4], 1 }
  0xe0   :  { %131 = vsyncpa [#allocation5], 1 }

</bundles_post_ra>
